<compile_context>
chip_gen: v7x
topology: tpu7x:2x2x1
jax: 0.10.0
libtpu: 0.0.40
codegen_flags: <defaults>
</compile_context>

<pallas_src>
import functools

import jax
import jax.numpy as jnp
from jax.experimental import pallas as pl
from jax.experimental.pallas import tpu as pltpu


# ----------------------------------------------------------------------------- helpers
def _dot_nt(x, w):
    """x:(M,K) contracted with w:(N,K) on K -> (M,N) f32 accumulation.

    LHS contraction on the minor axis (MXU-native streaming); RHS in transposed
    orientation (also MXU-native), so no in-kernel relayout is ever needed.
    """
    return jax.lax.dot_general(
        x, w, dimension_numbers=(((1,), (1,)), ((), ())),
        preferred_element_type=jnp.float32)


def _dot_nn(x, w):
    """x:(M,K) @ w:(K,N) -> (M,N) f32 accumulation."""
    return jax.lax.dot_general(
        x, w, dimension_numbers=(((1,), (0,)), ((), ())),
        preferred_element_type=jnp.float32)


def _layernorm(x, g, b, eps=1e-5):
    mu = jnp.mean(x, axis=-1, keepdims=True)
    xc = x - mu
    var = jnp.mean(xc * xc, axis=-1, keepdims=True)
    return xc * jax.lax.rsqrt(var + eps) * g + b


def _full(shape):
    nd = len(shape)
    return pl.BlockSpec(shape, lambda i, _nd=nd: (0,) * _nd)


def _row_tile(m):
    # TODO(synk): add an N grid axis to the linears for vocab-sized output widths.
    for t in (1024, 512, 256, 128, 64, 32, 16, 8):
        if m % t == 0 and m >= 2 * t:
            return t
    return m


def _divisor_tile(n, cap=512):
    for t in (512, 256, 128, 64, 32, 16, 8):
        if t <= cap and n % t == 0:
            return t
    return n


_VMEM_LIMIT = 48 * 1024 * 1024          # explicit scoped-VMEM budget (fits v7x's 64 MiB)
_PARALLEL_1D = pltpu.CompilerParams(dimension_semantics=("parallel",))


# ----------------------------------------------------------------------------- kernels
def _embed_kernel(x_ref, w_ref, b_ref, o_ref):
    # x:(TM,Din) f32, w:(D,Din) bf16, b:(1,D) f32 -> o:(TM,D) bf16
    y = _dot_nt(x_ref[...].astype(jnp.bfloat16), w_ref[...]) + b_ref[...]
    o_ref[...] = y.astype(jnp.bfloat16)


def _final_norm_decoder_kernel(x_ref, g_ref, b_ref, w_ref, bd_ref, o_ref):
    # fused final LayerNorm + decoder Linear; x:(TM,D) bf16 -> o:(TM,Npad) f32
    h = _layernorm(x_ref[...].astype(jnp.float32), g_ref[...], b_ref[...])
    o_ref[...] = _dot_nt(h.astype(jnp.bfloat16), w_ref[...]) + bd_ref[...]


def _encoder_stack_kernel(
    x_ref, wqkv_ref, bqkv_ref, wo_ref, bo_ref,
    ln1g_ref, ln1b_ref, ln2g_ref, ln2b_ref,
    w1_ref, b1_ref, w2_ref, b2_ref,
    o_ref, h_ref, *, num_heads, k_tile, ff_tile,
):
    layer = pl.program_id(1)

    # Residual stream lives in f32 VMEM scratch across the layer grid axis.
    @pl.when(layer == 0)
    def _():
        h_ref[...] = x_ref[0].astype(jnp.float32)

    x = h_ref[...]                                   # (S, D) f32
    S, D = x.shape
    hd = D // num_heads
    xb = x.astype(jnp.bfloat16)

    # ---- fused QKV projection, x-major (1/sqrt(hd) already folded into Q rows) ----
    qkv = _dot_nt(xb, wqkv_ref[0]) + bqkv_ref[0]     # (S, 3D) f32
    qkv = qkv.astype(jnp.bfloat16)

    n_kt = S // k_tile

    # ---- multi-head self-attention: per-head canonical matmuls + online softmax ----
    # Head merge is fused into the output projection by accumulating per-head
    # (S,hd)x(hd,D) contributions into `attn` -- no concat, no transpose.
    attn = jnp.zeros((S, D), jnp.float32)
    for h in range(num_heads):
        qo, ko, vo = h * hd, D + h * hd, 2 * D + h * hd
        q_h = qkv[:, qo:qo + hd]                                      # (S, hd) bf16

        def scores(kt, _q=q_h, _ko=ko):
            k_t = qkv[kt * k_tile:(kt + 1) * k_tile, _ko:_ko + hd]    # (tk, hd)
            return _dot_nt(_q, k_t)                                   # (S, tk) f32

        def pv(p, kt, _vo=vo):
            v_t = qkv[kt * k_tile:(kt + 1) * k_tile, _vo:_vo + hd]    # (tk, hd)
            return _dot_nn(p.astype(jnp.bfloat16), v_t)               # (S, hd) f32

        s = scores(0)
        m = jnp.max(s, axis=-1, keepdims=True)
        p = jnp.exp(s - m)
        lsum = jnp.sum(p, axis=-1, keepdims=True)
        acc = pv(p, 0)
        for kt in range(1, n_kt):            # static unroll; single iter at small S
            s = scores(kt)
            m_new = jnp.maximum(m, jnp.max(s, axis=-1, keepdims=True))
            alpha = jnp.exp(m - m_new)
            p = jnp.exp(s - m_new)
            lsum = alpha * lsum + jnp.sum(p, axis=-1, keepdims=True)
            acc = alpha * acc + pv(p, kt)
            m = m_new

        pv_h = (acc * pl.reciprocal(lsum, approx=True)).astype(jnp.bfloat16)  # (S, hd)
        attn = attn + _dot_nt(pv_h, wo_ref[0, :, qo:qo + hd])                 # (S, D)

    attn = attn + bo_ref[0]

    # ---- add & norm 1 (post-norm, norm_first=False) ----
    h1 = _layernorm(x + attn, ln1g_ref[0], ln1b_ref[0])
    h1b = h1.astype(jnp.bfloat16)

    # ---- feed-forward (relu), hidden dim chunked with an f32 accumulator ----
    ff_dim = w1_ref.shape[1]
    ff = jnp.zeros((S, D), jnp.float32)
    for c in range(ff_dim // ff_tile):
        c0 = c * ff_tile
        z = _dot_nt(h1b, w1_ref[0, c0:c0 + ff_tile, :]) + b1_ref[0, :, c0:c0 + ff_tile]
        z = jnp.maximum(z, 0.0).astype(jnp.bfloat16)                  # (S, tff)
        ff = ff + _dot_nt(z, w2_ref[0, :, c0:c0 + ff_tile])           # (S, D)
    ff = ff + b2_ref[0]

    # ---- add & norm 2 ----
    out = _layernorm(h1 + ff, ln2g_ref[0], ln2b_ref[0])
    h_ref[...] = out

    @pl.when(layer == pl.num_programs(1) - 1)
    def _():
        o_ref[0] = out.astype(jnp.bfloat16)


# ----------------------------------------------------------------------------- wrappers
def pallas_embedding(x2d, w_bf16, b_row):
    M, Din = x2d.shape
    D = w_bf16.shape[0]
    tm = _row_tile(M)
    return pl.pallas_call(
        _embed_kernel,
        out_shape=jax.ShapeDtypeStruct((M, D), jnp.bfloat16),
        grid=(M // tm,),
        in_specs=[pl.BlockSpec((tm, Din), lambda i: (i, 0)),
                  _full((D, Din)), _full((1, D))],
        out_specs=pl.BlockSpec((tm, D), lambda i: (i, 0)),
        compiler_params=_PARALLEL_1D,
    )(x2d, w_bf16, b_row)


def pallas_final_norm_decoder(x2d, g_row, b_row, w_bf16, bd_row):
    M, D = x2d.shape
    Npad = w_bf16.shape[0]
    tm = _row_tile(M)
    return pl.pallas_call(
        _final_norm_decoder_kernel,
        out_shape=jax.ShapeDtypeStruct((M, Npad), jnp.float32),
        grid=(M // tm,),
        in_specs=[pl.BlockSpec((tm, D), lambda i: (i, 0)),
                  _full((1, D)), _full((1, D)),
                  _full((Npad, D)), _full((1, Npad))],
        out_specs=pl.BlockSpec((tm, Npad), lambda i: (i, 0)),
        compiler_params=_PARALLEL_1D,
    )(x2d, g_row, b_row, w_bf16, bd_row)


def pallas_encoder_stack(x_bf16, stack, num_heads):
    B, S, D = x_bf16.shape
    L = stack['wqkv'].shape[0]
    FF = stack['w1'].shape[1]
    k_tile = _divisor_tile(S)
    ff_tile = _divisor_tile(FF)
    kernel = functools.partial(_encoder_stack_kernel, num_heads=num_heads,
                               k_tile=k_tile, ff_tile=ff_tile)
    names = ('wqkv', 'bqkv', 'wo', 'bo', 'ln1g', 'ln1b', 'ln2g', 'ln2b',
             'w1', 'b1', 'w2', 'b2')
    args = (x_bf16,) + tuple(stack[n] for n in names)

    def _layer_spec(a):
        return pl.BlockSpec((1,) + a.shape[1:], lambda b, l: (l, 0, 0))

    in_specs = [pl.BlockSpec((1, S, D), lambda b, l: (b, 0, 0))]
    in_specs += [_layer_spec(a) for a in args[1:]]
    return pl.pallas_call(
        kernel,
        out_shape=jax.ShapeDtypeStruct((B, S, D), jnp.bfloat16),
        grid=(B, L),
        in_specs=in_specs,
        out_specs=pl.BlockSpec((1, S, D), lambda b, l: (b, 0, 0)),
        scratch_shapes=[pltpu.VMEM((S, D), jnp.float32)],
        compiler_params=pltpu.CompilerParams(
            dimension_semantics=("parallel", "arbitrary"),
            vmem_limit_bytes=_VMEM_LIMIT),
    )(*args)


# ----------------------------------------------------------------------------- model
def init_params(key, input_dim, model_dim, num_heads, num_layers, output_dim,
                dim_feedforward=2048):
    D, FF = model_dim, dim_feedforward
    assert D % num_heads == 0
    hd = D // num_heads
    scale = 1.0 / float(hd) ** 0.5
    keys = jax.random.split(key, 2 + num_layers)

    def w_init(k, out_f, in_f):
        # TODO(synk): PyTorch uses xavier/kaiming init; irrelevant if real weights load.
        return jax.random.normal(k, (out_f, in_f), jnp.float32) * 0.02

    params = {'output_dim': output_dim}
    params['emb_w'] = w_init(keys[0], D, input_dim).astype(jnp.bfloat16)
    params['emb_b'] = jnp.zeros((1, D), jnp.float32)

    # Decoder: lane-pad output width to a multiple of 128 for unmasked stores.
    npad = max(128, -(-output_dim // 128) * 128)
    dec_w = jnp.zeros((npad, D), jnp.float32).at[:output_dim].set(
        w_init(keys[1], output_dim, D))
    params['dec_w'] = dec_w.astype(jnp.bfloat16)
    params['dec_b'] = jnp.zeros((1, npad), jnp.float32)
    params['final_ln_g'] = jnp.ones((1, D), jnp.float32)
    params['final_ln_b'] = jnp.zeros((1, D), jnp.float32)

    names = ('wqkv', 'bqkv', 'wo', 'bo', 'ln1g', 'ln1b', 'ln2g', 'ln2b',
             'w1', 'b1', 'w2', 'b2')
    per_layer = {n: [] for n in names}
    for li in range(num_layers):
        lk = jax.random.split(keys[2 + li], 4)
        wqkv = w_init(lk[0], 3 * D, D)
        bqkv = jnp.zeros((1, 3 * D), jnp.float32)
        # Fold 1/sqrt(head_dim) into the Q rows of in_proj (weights + bias):
        # softmax(((x Wq^T + bq)/sqrt(hd)) K^T) == softmax((x Wq'^T + bq') K^T).
        wqkv = wqkv.at[:D].multiply(scale)
        bqkv = bqkv.at[:, :D].multiply(scale)
        per_layer['wqkv'].append(wqkv.astype(jnp.bfloat16))
        per_layer['bqkv'].append(bqkv)
        per_layer['wo'].append(w_init(lk[1], D, D).astype(jnp.bfloat16))
        per_layer['bo'].append(jnp.zeros((1, D), jnp.float32))
        per_layer['w1'].append(w_init(lk[2], FF, D).astype(jnp.bfloat16))
        per_layer['b1'].append(jnp.zeros((1, FF), jnp.float32))
        per_layer['w2'].append(w_init(lk[3], D, FF).astype(jnp.bfloat16))
        per_layer['b2'].append(jnp.zeros((1, D), jnp.float32))
        per_layer['ln1g'].append(jnp.ones((1, D), jnp.float32))
        per_layer['ln1b'].append(jnp.zeros((1, D), jnp.float32))
        per_layer['ln2g'].append(jnp.ones((1, D), jnp.float32))
        per_layer['ln2b'].append(jnp.zeros((1, D), jnp.float32))
    params['stack'] = {n: jnp.stack(v, axis=0) for n, v in per_layer.items()}
    return params


def transformer_forward(x, params, num_heads):
    B, S, Din = x.shape
    D = params['emb_w'].shape[0]
    out_dim = params['output_dim']

    h = pallas_embedding(x.reshape(B * S, Din), params['emb_w'], params['emb_b'])
    h = h.reshape(B, S, D)
    h = pallas_encoder_stack(h, params['stack'], num_heads)
    out = pallas_final_norm_decoder(
        h.reshape(B * S, D),
        params['final_ln_g'], params['final_ln_b'],
        params['dec_w'], params['dec_b'])
    return out[:, :out_dim].reshape(B, S, out_dim)


# ----------------------------------------------------------------------------- main
if __name__ == "__main__":
    INPUT_DIM, MODEL_DIM, NUM_HEADS, NUM_LAYERS, OUTPUT_DIM = 16, 32, 4, 2, 8
    BATCH, SEQ = 2, 8

    key = jax.random.PRNGKey(0)
    pkey, xkey = jax.random.split(key)
    params = init_params(pkey, INPUT_DIM, MODEL_DIM, NUM_HEADS, NUM_LAYERS, OUTPUT_DIM)
    x = jax.random.normal(xkey, (BATCH, SEQ, INPUT_DIM), jnp.float32)

    out = transformer_forward(x, params, NUM_HEADS)
    out = jax.block_until_ready(out)
    assert out.shape == (BATCH, SEQ, OUTPUT_DIM) and out.dtype == jnp.float32
    assert bool(jnp.all(jnp.isfinite(out)))
    print("KERNEL_OK")
</pallas_src>

<mosaic_0001>
module attributes {stable_mosaic.version = 11 : i64} {
  func.func @_embed_kernel(%arg0: i32, %arg1: memref<8x16xf32, #tpu.memory_space<vmem>>, %arg2: memref<32x16xbf16, #tpu.memory_space<vmem>>, %arg3: memref<1x32xf32, #tpu.memory_space<vmem>>, %arg4: memref<8x32xbf16, #tpu.memory_space<vmem>>) attributes {dimension_semantics = [#tpu.dimension_semantics<parallel>], iteration_bounds = array<i64: 2>, scalar_prefetch = 0 : i64, scratch_operands = 0 : i64, tpu.core_type = #tpu.core_type<tc>, window_params = [{transform_indices = @transform_0, window_bounds = array<i64: 8, 16>}, {pipeline_mode = #tpu.pipeline_mode<synchronous>, transform_indices = @transform_1, window_bounds = array<i64: 32, 16>}, {pipeline_mode = #tpu.pipeline_mode<synchronous>, transform_indices = @transform_2, window_bounds = array<i64: 1, 32>}, {transform_indices = @transform_3, window_bounds = array<i64: 8, 32>}]} {
    %c0 = arith.constant 0 : index
    %c0_0 = arith.constant 0 : index
    %0 = vector.load %arg1[%c0, %c0_0] : memref<8x16xf32, #tpu.memory_space<vmem>>, vector<8x16xf32>
    %1 = arith.truncf %0 : vector<8x16xf32> to vector<8x16xbf16>
    %c0_1 = arith.constant 0 : index
    %c0_2 = arith.constant 0 : index
    %2 = vector.load %arg2[%c0_1, %c0_2] : memref<32x16xbf16, #tpu.memory_space<vmem>>, vector<32x16xbf16>
    %cst = arith.constant dense<0.000000e+00> : vector<8x32xf32>
    %3 = tpu.matmul %1, %2, %cst {dimension_numbers = #tpu.dot_dimension_numbers<[1], [1], [0], [0], [0, 0, 1, 0], [], []>} : vector<8x16xbf16>, vector<32x16xbf16>, vector<8x32xf32> -> vector<8x32xf32>
    %c0_3 = arith.constant 0 : index
    %c0_4 = arith.constant 0 : index
    %4 = vector.load %arg3[%c0_3, %c0_4] : memref<1x32xf32, #tpu.memory_space<vmem>>, vector<1x32xf32>
    %5 = vector.broadcast %4 : vector<1x32xf32> to vector<8x32xf32>
    %6 = arith.addf %3, %5 : vector<8x32xf32>
    %7 = arith.truncf %6 : vector<8x32xf32> to vector<8x32xbf16>
    %c0_5 = arith.constant 0 : index
    %c0_6 = arith.constant 0 : index
    %8 = vector.load %arg4[%c0_5, %c0_6] : memref<8x32xbf16, #tpu.memory_space<vmem>>, vector<8x32xbf16>
    tpu.vector_store %arg4[%c0_5, %c0_6], %7 {strides = array<i32>} : memref<8x32xbf16, #tpu.memory_space<vmem>>, vector<8x32xbf16>,
    return
  }
  func.func @transform_0(%arg0: i32) -> (i32, i32) {
    %c0_i32 = arith.constant 0 : i32
    %c0_i32_0 = arith.constant 0 : i32
    return %arg0, %c0_i32 : i32, i32
  }
  func.func @transform_1(%arg0: i32) -> (i32, i32) {
    %c0_i32 = arith.constant 0 : i32
    %c0_i32_0 = arith.constant 0 : i32
    %c0_i32_1 = arith.constant 0 : i32
    return %c0_i32, %c0_i32_0 : i32, i32
  }
  func.func @transform_2(%arg0: i32) -> (i32, i32) {
    %c0_i32 = arith.constant 0 : i32
    %c0_i32_0 = arith.constant 0 : i32
    %c0_i32_1 = arith.constant 0 : i32
    return %c0_i32, %c0_i32_0 : i32, i32
  }
  func.func @transform_3(%arg0: i32) -> (i32, i32) {
    %c0_i32 = arith.constant 0 : i32
    %c0_i32_0 = arith.constant 0 : i32
    return %arg0, %c0_i32 : i32, i32
  }
}

</mosaic_0001>

<bundles_post_ra>
// kernel: tpu_custom_call.1
= control target key start
LH: loop header
LB: loop body
LE: loop exit
PB: predicated region body
PF: predicated region fallthrough
CT: control target
= control target key end

     0   :  { %8 = vsyncpa [#allocation3], 0  ;;  %s580_s0 = inlined_call_operand.vmem [shape: f32[16,16], index: 0, kind: input, shape index: {}]   ;;  %s581_s1 = inlined_call_operand.vmem [shape: bf16[32,16], index: 1, kind: input, shape index: {}]   ;;  %s582_s2 = inlined_call_operand.vmem [shape: f32[1,32], index: 2, kind: input, shape index: {}]   ;;  %s583_s3 = inlined_call_operand.hbm [shape: bf16[16,32], index: 3, kind: output, shape index: {}]  }
   0x1   :  { %10 = vsyncpa [#allocation3 + $0x1], 0  ;;  %s471_s12 = smov 0   ;;  %s473_s13 = smov 0  }
   0x2   :  { %s475_s14 = smov 0   ;;  %s477_s15 = smov 0  }
   0x3 LB: > { %s492_s16 = sadd.s32 4294967295, %s446_s15   ;;  %s316_s17 = sadd.s32 4294967294, %s446_s15   ;;  %s446_s15 = sphi %s477_s15, %s589_s15   ;;  %s442_s14 = sphi %s475_s14, %s588_s14   ;;  %s438_s13 = sphi %s473_s13, %s587_s13   ;;  %s434_s12 = sphi %s471_s12, %s586_s12  }
   0x4   : > { %s496_s18 = sadd.s32 1, %s446_s15   ;;  %s91_s19 = sadd.s32 1, %s442_s14 }
   0x5   : > { %s88_s20 = ssub.s32 %s446_s15, %s496_s18  ;;  %p101_p0 = scmp.ne.s32.totalorder %s442_s14, %s438_s13 }
   0x6   : > { %p89_p1 = scmp.eq.s32.totalorder %s88_s20, 0  ;;  %p102_p2 = scmp.eq.s32.totalorder %s492_s16, 1 }
   0x7   : > { %p107_p3 = scmp.ne.s32.totalorder %s438_s13, %s434_s12  ;;  %p108_p4 = scmp.eq.s32.totalorder %s316_s17, 1 }
   0x8   : > { %s507_s21 = scalar_select %p89_p1, %s442_s14, %s91_s19  }
   0x9   : > { %p509_p5 = por %p102_p2, %p101_p0  ;;  %p513_p6 = por %p108_p4, %p107_p3 }
   0xa   : > { %p319_p7 = scmp.ge.s32.totalorder %s446_s15, 1  ;;  %p139_p8 = scmp.lt.s32.totalorder %s446_s15, 3 }
   0xc   : > { %p140_p9 = pnand %p319_p7, %p139_p8 }
   0xd   : > { %v382_v0 = vld [vmem:[%s581_s1] sm:$0xff] (!%p140_p9)   ;;  %v448_v1 = vmov (!%p140_p9), 0.0   ;;  %vm190_vm0 = vcmask (!%p140_p9), 130048   ;;  %p162_p10 = scmp.lt.s32.totalorder (!%p140_p9), %s492_s16, 1  ;;  %vm449_vm1 = vmmov (!%p140_p9), 0   ;;  %v383_v3 = vld [vmem:[%s581_s1 + $0x8] sm:$0xff] (!%p140_p9)  }
   0xe   : > { %143 = sbr.rel (%p140_p9) target bundleno = 260 (0x104), region = 32  ;;  %333 = vmatprep.subr.bf16.mxu0 (!%p140_p9), %v448_v1  ;;  %v195_v2 = vsel (!%p140_p9), %vm190_vm0, %v382_v0, 0  ;;  %337 = vmatprep.mubr.msk.bf16.mxu0 (!%p140_p9), %vm449_vm1, %v448_v1  ;;  %v198_v4 = vsel (!%p140_p9), %vm190_vm0, %v383_v3, 0  ;;  %s159_s6 = sand.u32 (!%p140_p9), 1, %s438_s13   ;;  %v322_v7 = vld [vmem:[%s582_s2] ss:$0 sm:$0xff] (!%p140_p9) }
   0xf   : > { %334 = vmatpush3.bf16.xpose.msra.mxu0 (!%p140_p9), %v195_v2  ;;  %s320_s7 = sshll.u32 (!%p140_p9), %s159_s6, 2  ;;  %s327_s10 = sshll.u32 (!%p140_p9), %s492_s16, 6  ;;  %vm241_vm2 = vcmask (!%p140_p9), 257024  }
  0x10   : > { %335 = vmatprep.subr.bf16.mxu0 (!%p140_p9), %v448_v1  ;;  %s161_s11 = scalar_lea.vmem (!%p140_p9), [#allocation2], %s320_s7  ;;  %s538_s24 = scalar_lea.hbm (!%p140_p9), %s583_s3, %s327_s10 }
  0x11   : > { %s257_s17 = sshll.u32 (!%p140_p9), %s161_s11, 4  ;;  %s450_s26 = smov (!%p140_p9), [#allocation2]   ;;  %s540_s17 = int_to_ptr.vmem [resolvable:$true] %s257_s17 }
  0x12   : > { %s384_s25 = scalar_lea.vmem (!%p140_p9), %s540_s17, 64  ;;  %s388_s27 = sshll.u32 (!%p140_p9), %s450_s26, 4  ;;  %s389_s27 = int_to_ptr.vmem [resolvable:$false] %s388_s27 }
  0x13   : > { %p385_p11 = scmp.ne.s32.totalorder (!%p140_p9), %s540_s17, %s384_s25  ;;  %p391_p0 = scmp.lt.s32.totalorder (!%p140_p9), %s540_s17, %s389_s27 }
  0x15   : > { %s163_s28 = scalar_select %p162_p10, %s492_s16, 1 }
  0x16   : > { %s244_s16 = scalar_lea.sflag [#allocation3], %s159_s6  ;;  %p386_p12 = pnand %p385_p11, %p509_p5 }
  0x17   : > { %s321_s29 = sshll.u32 %s163_s28, 3  ;;  %336 = vmatpush3.bf16.xpose.msra.mxu0 %v198_v4  ;;  %s390_s28 = scalar_lea.vmem %s389_s27, 128 }
  0x18   : > { %s165_s5 = scalar_lea.vmem %s580_s0, %s321_s29  ;;  %p387_p13 = pneg %p386_p12 }
  0x19   : > { %v167_v5 = vld [vmem:[%s165_s5] sm:$0xff]  ;;  %p392_p1 = scmp.lt.s32.totalorder %s390_s28, %s384_s25 }
  0x1a   : > { %v168_v6 = vpack.c.bf16 %v167_v5, %v167_v5 }
  0x1b   : > { %p393_p2 = por %p392_p1, %p391_p0 }
  0x1d   : > { %p394_p3 = pnand %p393_p2, %p387_p13 }
  0x1e   : > { %338 = vmatmul.mubr.msk.bf16.vlgmr.msra.gmra.mrb[0].mxu0 %vm190_vm0, %v168_v6 }
  0xf1   : > { %v234_v8 = vpop.f32.mrb[0].mxu0 }
  0xf2   : > { %v235_v9 = vadd.f32 %v322_v7, %v234_v8  ;;  %v339_v10 = vpop.f32.mrb[1].mxu0 }
  0xf3   : > { %v237_v11 = vpop.f32.mrb[2].mxu0 }
  0xf4   : > { %v240_v12 = vpack.c.bf16 %v235_v9, %v235_v9  ;;  %v340_v13 = vpop.f32.mrb[3].mxu0 }
  0xf6   : > { %242 = vst.msk [vmem:[%s161_s11] sm:$0xf] %vm241_vm2, %v240_v12 }
  0xf7   : > { %397 = shalt.err (!%p394_p3)
}
  0xf8   : > { %s398_s29 = scalar_lea.hbm %s538_s24, 64  ;;  %s402_s5 = scalar_lea.hbm %s583_s3, 128 }
  0xf9   : > { %p399_p4 = scmp.ne.s32.totalorder %s538_s24, %s398_s29  ;;  %p403_p9 = scmp.lt.u32.totalorder %s538_s24, %s583_s3 }
  0xfa   : > { %p404_p10 = scmp.lt.u32.totalorder %s402_s5, %s398_s29  ;;  %p406_p12 = scmp.lt.u32.totalorder %s398_s29, %s538_s24 }
  0xfb   : > { %p400_p7 = pnand %p399_p4, %p509_p5 }
  0xfc   : > { %p405_p11 = por %p404_p10, %p403_p9 }
  0xfd   : > { %p401_p8 = pneg %p400_p7 }
  0xfe   : > { %p407_p13 = por %p406_p12, %p405_p11 }
 0x100   : > { %p408_p0 = pnand %p407_p13, %p401_p8 }
 0x102   : > { %411 = shalt.err (!%p408_p0)
}
 0x103   : > { %341 = dma.vmem_to_hbm [thread:$0]  (%p509_p5), %s540_s17, 64, %s538_s24, %s244_s16  }
 0x104 PF: > { %p347_p1 = scmp.ge.s32.totalorder %s446_s15, 2  ;;  %s269_s8 = sand.u32 1, %s434_s12  }
 0x105   : > { %s270_s9 = scalar_lea.sflag [#allocation3], %s269_s8 }
 0x106   : > { %p344_p2 = pnand %p347_p1, %p513_p6 }
 0x108   : > { %429 = dma.done.wait (!%p344_p2), %s270_s9, 64  }
 0x109   : > { %431 = vsyncadd (!%p344_p2), %s270_s9, 4294967232  ;;  %p13_p3 = scmp.ge.s32.totalorder %s496_s18, 4   ;;  %s586_s12 = smov %s438_s13 }
 0x10a   : > { %s587_s13 = smov %s442_s14  ;;  %s588_s14 = smov %s507_s21 }
 0x10b   : > { %s589_s15 = smov %s496_s18  ;;  %15 = sbr.rel (!%p13_p3) target bundleno = 3 (0x3), region = 67 }
 0x112   :  { %275 = vsyncpa [#allocation3], 1 }
 0x113   :  { %277 = vsyncpa [#allocation3 + $0x1], 1 }

</bundles_post_ra>
